<compile_context>
chip_gen: v7x
topology: tpu7x:2x2x1
jax: 0.10.0
libtpu: 0.0.40
codegen_flags: <defaults>
</compile_context>

<pallas_src>
import math

import jax
import jax.numpy as jnp
from jax.experimental import pallas as pl
from jax.experimental.pallas import tpu as pltpu


def _fusion_kernel(w_ref, o1_ref, o2_ref, out_ref):
    # w_ref: (2, Dp) ALREADY-normalized (softmax'd) weights; invariant block.
    n0 = w_ref[0:1, :]                       # (1, Dp) broadcasts over rows
    n1 = w_ref[1:2, :]
    out_ref[...] = n0 * o1_ref[...] + n1 * o2_ref[...]


def _sublane_multiple(dtype):
    return {4: 8, 2: 16, 1: 32}.get(jnp.dtype(dtype).itemsize, 8)


def _vmem_plan():
    """(vmem_limit_bytes, tile_budget_bytes) — generation aware."""
    try:
        cap = pltpu.get_tpu_info().vmem_capacity_bytes
    except Exception:
        cap = 64 * 1024 * 1024
    if cap >= 96 * 1024 * 1024:
        # v5e / v6e: 128 MiB physical VMEM -> bigger tiles, raised scoped limit.
        return 48 * 1024 * 1024, 36 * 1024 * 1024
    # v7x: 64 MiB per TensorCore -> stay within the 32 MiB scoped default.
    return 32 * 1024 * 1024, 24 * 1024 * 1024


def _choose_fold(num, d, target_lanes=1024):
    """Fold rows into lanes so the last dim becomes a wide multiple of 128."""
    if d % 128 == 0:
        return 1
    g = 128 // math.gcd(d, 128)              # minimal fold making fold*d % 128 == 0
    fold = g
    while fold * 2 * d <= target_lanes and fold * 2 <= max(num, g):
        fold *= 2
    return fold


def _pick_tile_rows(np_rows, dp, dtype_bytes, sublane, tile_budget, requested):
    if requested is not None:
        return requested
    # 3 streams (o1, o2, out) x 2 pipeline buffers per tile must fit the budget.
    tr = tile_budget // (6 * dp * dtype_bytes)
    tr = max(sublane, (tr // sublane) * sublane)
    # Guarantee >= 2 grid steps when there is enough data so both v7x TensorCores
    # (megacore) get a share of the HBM traffic.
    half = ((np_rows // 2) // sublane) * sublane
    if half >= sublane:
        tr = min(tr, half)
    if tr >= np_rows:
        return np_rows                        # single full-extent block (always legal)
    return tr


def output_fusion(weights, output1, output2, *, tile_rows=None,
                  min_pallas_bytes=1 << 20, donate_output1=False):
    """weights: (2, D); output1, output2: (num, D) -> fused (num, D)."""
    num, d = output1.shape
    assert weights.shape == (2, d)
    assert output2.shape == (num, d)

    out_dtype = output1.dtype
    dtype_bytes = jnp.dtype(out_dtype).itemsize

    # Hoist the tiny (2, D) softmax out of the kernel (one-shot, in f32).
    nw = jax.nn.softmax(weights.astype(jnp.float32), axis=0).astype(out_dtype)

    # Small-input fast path: pallas_call/DMA setup overhead dominates tiny inputs.
    if num * d * dtype_bytes < min_pallas_bytes:
        return nw[0][None, :] * output1 + nw[1][None, :] * output2

    # Lane-dense fold: make the last dim a wide multiple of 128 (pad rows if needed).
    fold = _choose_fold(num, d)
    num_padded = pl.cdiv(num, fold) * fold
    if num_padded != num:
        pad = num_padded - num
        o1 = jnp.pad(output1, ((0, pad), (0, 0)))
        o2 = jnp.pad(output2, ((0, pad), (0, 0)))
    else:
        o1, o2 = output1, output2
    dp = d * fold
    np_rows = num_padded // fold
    o1 = o1.reshape(np_rows, dp)
    o2 = o2.reshape(np_rows, dp)
    nw_p = jnp.tile(nw, (1, fold))            # (2, dp): weight pattern repeats every d lanes

    sublane = _sublane_multiple(out_dtype)
    vmem_limit, tile_budget = _vmem_plan()
    tr = _pick_tile_rows(np_rows, dp, dtype_bytes, sublane, tile_budget, tile_rows)
    grid = (pl.cdiv(np_rows, tr),)            # ragged last block handled by Pallas

    kwargs = {}
    if donate_output1:
        # output1's (folded) HBM buffer is reused for the result.
        kwargs["input_output_aliases"] = {1: 0}

    fused_folded = pl.pallas_call(
        _fusion_kernel,
        out_shape=jax.ShapeDtypeStruct((np_rows, dp), out_dtype),
        grid_spec=pltpu.PrefetchScalarGridSpec(
            num_scalar_prefetch=0,
            grid=grid,
            in_specs=[
                pl.BlockSpec((2, dp), lambda i: (0, 0)),    # normalized weights (invariant)
                pl.BlockSpec((tr, dp), lambda i: (i, 0)),   # output1 tile
                pl.BlockSpec((tr, dp), lambda i: (i, 0)),   # output2 tile
            ],
            out_specs=pl.BlockSpec((tr, dp), lambda i: (i, 0)),
        ),
        compiler_params=pltpu.CompilerParams(
            dimension_semantics=("parallel",),
            vmem_limit_bytes=vmem_limit,
        ),
        **kwargs,
    )(nw_p, o1, o2)

    fused = fused_folded.reshape(num_padded, d)
    if num_padded != num:
        fused = fused[:num]
    return fused


def _reference(weights, output1, output2):
    nw = jax.nn.softmax(weights, axis=0)
    return nw[0][None, :] * output1 + nw[1][None, :] * output2


if __name__ == "__main__":
    feature_dim = 64

    key = jax.random.PRNGKey(0)
    kw, k1, k2, k3, k4 = jax.random.split(key, 5)
    # deterministic synthetic parameter (PyTorch: torch.randn(2, feature_dim))
    weights = jax.random.normal(kw, (2, feature_dim), dtype=jnp.float32)

    # Small case consistent with the module (num=8, D=64) — force the Pallas path
    # (min_pallas_bytes=0) so the kernel itself runs on the small shape.
    output1 = jax.random.normal(k1, (8, feature_dim), dtype=jnp.float32)
    output2 = jax.random.normal(k2, (8, feature_dim), dtype=jnp.float32)
    fused = jax.block_until_ready(
        output_fusion(weights, output1, output2, min_pallas_bytes=0))
    ref = _reference(weights, output1, output2)
    assert jnp.allclose(fused, ref, atol=1e-5, rtol=1e-5), "mismatch (small, pallas)"

    # Same small case through the auto-dispatch (XLA fast path).
    fused_fast = jax.block_until_ready(output_fusion(weights, output1, output2))
    assert jnp.allclose(fused_fast, ref, atol=1e-5, rtol=1e-5), "mismatch (small, fast path)"

    # Larger, ragged case: exercises wide lane fold + row padding + multi-step cdiv grid.
    big1 = jax.random.normal(k3, (4103, feature_dim), dtype=jnp.float32)
    big2 = jax.random.normal(k4, (4103, feature_dim), dtype=jnp.float32)
    fused_big = jax.block_until_ready(output_fusion(weights, big1, big2))
    ref_big = _reference(weights, big1, big2)
    assert jnp.allclose(fused_big, ref_big, atol=1e-5, rtol=1e-5), "mismatch (big)"

    print("KERNEL_OK")
</pallas_src>

<mosaic_0001>
module attributes {stable_mosaic.version = 11 : i64} {
  func.func @_fusion_kernel(%arg0: i32, %arg1: memref<2x512xf32, #tpu.memory_space<vmem>>, %arg2: memref<1x512xf32, #tpu.memory_space<vmem>>, %arg3: memref<1x512xf32, #tpu.memory_space<vmem>>, %arg4: memref<1x512xf32, #tpu.memory_space<vmem>>) attributes {dimension_semantics = [#tpu.dimension_semantics<parallel>], iteration_bounds = array<i64: 1>, scalar_prefetch = 0 : i64, scratch_operands = 0 : i64, tpu.core_type = #tpu.core_type<tc>, window_params = [{pipeline_mode = #tpu.pipeline_mode<synchronous>, transform_indices = @transform_0, window_bounds = array<i64: 2, 512>}, {transform_indices = @transform_1, window_bounds = array<i64: 1, 512>}, {transform_indices = @transform_2, window_bounds = array<i64: 1, 512>}, {transform_indices = @transform_3, window_bounds = array<i64: 1, 512>}]} {
    %c0 = arith.constant 0 : index
    %c0_0 = arith.constant 0 : index
    %0 = vector.load %arg1[%c0, %c0_0] : memref<2x512xf32, #tpu.memory_space<vmem>>, vector<1x512xf32>
    %c1 = arith.constant 1 : index
    %c0_1 = arith.constant 0 : index
    %1 = vector.load %arg1[%c1, %c0_1] : memref<2x512xf32, #tpu.memory_space<vmem>>, vector<1x512xf32>
    %c0_2 = arith.constant 0 : index
    %c0_3 = arith.constant 0 : index
    %2 = vector.load %arg2[%c0_2, %c0_3] : memref<1x512xf32, #tpu.memory_space<vmem>>, vector<1x512xf32>
    %3 = arith.mulf %0, %2 : vector<1x512xf32>
    %c0_4 = arith.constant 0 : index
    %c0_5 = arith.constant 0 : index
    %4 = vector.load %arg3[%c0_4, %c0_5] : memref<1x512xf32, #tpu.memory_space<vmem>>, vector<1x512xf32>
    %5 = arith.mulf %1, %4 : vector<1x512xf32>
    %6 = arith.addf %3, %5 : vector<1x512xf32>
    %c0_6 = arith.constant 0 : index
    %c0_7 = arith.constant 0 : index
    %7 = vector.load %arg4[%c0_6, %c0_7] : memref<1x512xf32, #tpu.memory_space<vmem>>, vector<1x512xf32>
    tpu.vector_store %arg4[%c0_6, %c0_7], %6 {strides = array<i32>} : memref<1x512xf32, #tpu.memory_space<vmem>>, vector<1x512xf32>,
    return
  }
  func.func @transform_0(%arg0: i32) -> (i32, i32) {
    %c0_i32 = arith.constant 0 : i32
    %c0_i32_0 = arith.constant 0 : i32
    %c0_i32_1 = arith.constant 0 : i32
    return %c0_i32, %c0_i32_0 : i32, i32
  }
  func.func @transform_1(%arg0: i32) -> (i32, i32) {
    %c0_i32 = arith.constant 0 : i32
    %c0_i32_0 = arith.constant 0 : i32
    return %arg0, %c0_i32 : i32, i32
  }
  func.func @transform_2(%arg0: i32) -> (i32, i32) {
    %c0_i32 = arith.constant 0 : i32
    %c0_i32_0 = arith.constant 0 : i32
    return %arg0, %c0_i32 : i32, i32
  }
  func.func @transform_3(%arg0: i32) -> (i32, i32) {
    %c0_i32 = arith.constant 0 : i32
    %c0_i32_0 = arith.constant 0 : i32
    return %arg0, %c0_i32 : i32, i32
  }
}

</mosaic_0001>

<bundles_post_ra>
// kernel: tpu_custom_call.1
= control target key start
LH: loop header
LB: loop body
LE: loop exit
PB: predicated region body
PF: predicated region fallthrough
CT: control target
= control target key end

     0   :  { %8 = vsyncpa [#allocation3], 0  ;;  %s205_s0 = inlined_call_operand.hbm [shape: f32[2,512], index: 0, kind: input, shape index: {}]   ;;  %s206_s1 = inlined_call_operand.hbm [shape: f32[1,512], index: 1, kind: input, shape index: {}]   ;;  %s207_s2 = inlined_call_operand.vmem [shape: f32[1,512], index: 2, kind: input, shape index: {}]   ;;  %s208_s3 = inlined_call_operand.hbm [shape: f32[1,512], index: 3, kind: output, shape index: {}]  }
   0x1   :  { %9 = vsyncpa [#allocation6], 0 }
   0x2   :  { %10 = vsyncpa [#allocation4], 0  ;;  %s143_s12 = smov [#allocation2]   ;;  %s144_s14 = smov [#allocation5]  }
   0x3   :  { %s17_s13 = sshll.u32 %s143_s12, 4  ;;  %s27_s15 = sshll.u32 %s144_s14, 4  ;;  %s18_s13 = int_to_ptr.vmem [resolvable:$true] %s17_s13  ;;  %s28_s15 = int_to_ptr.vmem [resolvable:$true] %s27_s15 }
   0x4   :  { %s71_s18 = scalar_lea.hbm %s205_s0, 128 }
   0x5   :  { %p72_p0 = scmp.ne.s32.totalorder %s205_s0, %s71_s18  ;;  %p75_p1 = scmp.lt.u32.totalorder %s71_s18, %s205_s0 }
   0x7   :  { %p77_p2 = pnand %p75_p1, %p72_p0 }
   0x9   :  { %80 = shalt.err (!%p77_p2)
}
   0xa   :  { %s81_s23 = scalar_lea.vmem %s18_s13, 128  ;;  %p86_p4 = scmp.lt.s32.totalorder %s18_s13, %s18_s13 }
   0xb   :  { %p82_p3 = scmp.ne.s32.totalorder %s18_s13, %s81_s23  ;;  %p87_p5 = scmp.lt.s32.totalorder %s81_s23, %s81_s23 }
   0xd   :  { %p88_p6 = por %p87_p5, %p86_p4 }
   0xf   :  { %p89_p7 = pnand %p88_p6, %p82_p3 }
  0x11   :  { %92 = shalt.err (!%p89_p7)
}
  0x12   :  { %20 = dma.hbm_to_vmem [thread:$0]  %s205_s0, 128, %s18_s13, [#allocation3]  }
  0x13   :  { %s93_s28 = scalar_lea.hbm %s206_s1, 64 }
  0x14   :  { %p94_p8 = scmp.ne.s32.totalorder %s206_s1, %s93_s28  ;;  %p97_p9 = scmp.lt.u32.totalorder %s93_s28, %s206_s1 }
  0x16   :  { %p99_p10 = pnand %p97_p9, %p94_p8 }
  0x18   :  { %102 = shalt.err (!%p99_p10)
}
  0x19   :  { %s103_s6 = scalar_lea.vmem %s28_s15, 64  ;;  %p108_p12 = scmp.lt.s32.totalorder %s28_s15, %s28_s15 }
  0x1a   :  { %p104_p11 = scmp.ne.s32.totalorder %s28_s15, %s103_s6  ;;  %p109_p13 = scmp.lt.s32.totalorder %s103_s6, %s103_s6 }
  0x1c   :  { %p110_p0 = por %p109_p13, %p108_p12 }
  0x1e   :  { %p111_p1 = pnand %p110_p0, %p104_p11 }
  0x20   :  { %114 = shalt.err (!%p111_p1)
}
  0x21   :  { %30 = dma.hbm_to_vmem [thread:$0]  %s206_s1, 64, %s28_s15, [#allocation6]  }
  0x22   :  { %137 = dma.done.wait [#allocation3], 128  }
  0x23   :  { %138 = vsyncadd [#allocation3], 4294967168 }
  0x24   :  { %139 = dma.done.wait [#allocation6], 64  }
  0x25   :  { %140 = vsyncadd [#allocation6], 4294967232  ;;  %v47_v0 = vlaneseq  ;;  %v39_v1 = vld [vmem:[#allocation2] ss:$2 sm:$0xf]  ;;  %s145_s10 = smov [#allocation7]  }
  0x26   :  { %v41_v2 = vld [vmem:[#allocation2 + $0x1] ss:$2 sm:$0xf]  ;;  %v42_v3 = vld [vmem:[#allocation5] sm:$0xf]  ;;  %s58_s11 = sshll.u32 %s145_s10, 4  ;;  %s59_s11 = int_to_ptr.vmem [resolvable:$true] %s58_s11 }
  0x27   :  { %v44_v4 = vld [vmem:[%s207_s2] sm:$0xf]  ;;  %v43_v5 = vmul.f32 %v42_v3, %v39_v1  ;;  %vm49_vm0 = vcmp.lt.s32.totalorder %v47_v0, 512  ;;  %s115_s1 = scalar_lea.vmem %s59_s11, 64  ;;  %p120_p3 = scmp.lt.s32.totalorder %s59_s11, %s59_s11 }
  0x28   :  { %v45_v6 = vmul.f32 %v44_v4, %v41_v2  ;;  %p116_p2 = scmp.ne.s32.totalorder %s59_s11, %s115_s1  ;;  %p121_p4 = scmp.lt.s32.totalorder %s115_s1, %s115_s1 }
  0x2a   :  { %v46_v7 = vadd.f32 %v45_v6, %v43_v5  ;;  %p122_p5 = por %p121_p4, %p120_p3 }
  0x2c   :  { %51 = vst.msk [vmem:[#allocation7] sm:$0xf] %vm49_vm0, %v46_v7  ;;  %p123_p6 = pnand %p122_p5, %p116_p2 }
  0x2e   :  { %126 = shalt.err (!%p123_p6)
}
  0x2f   :  { %s127_s14 = scalar_lea.hbm %s208_s3, 64 }
  0x30   :  { %p128_p7 = scmp.ne.s32.totalorder %s208_s3, %s127_s14  ;;  %p131_p8 = scmp.lt.u32.totalorder %s127_s14, %s208_s3 }
  0x32   :  { %p133_p9 = pnand %p131_p8, %p128_p7 }
  0x34   :  { %136 = shalt.err (!%p133_p9)
}
  0x35   :  { %61 = dma.vmem_to_hbm [thread:$0]  %s59_s11, 64, %s208_s3, [#allocation4]  }
  0x36   :  { %141 = dma.done.wait [#allocation4], 64  }
  0x37   :  { %142 = vsyncadd [#allocation4], 4294967232 }
  0x38   :  { %65 = vsyncpa [#allocation3], 1 }
  0x39   :  { %66 = vsyncpa [#allocation6], 1 }
  0x3a   :  { %67 = vsyncpa [#allocation4], 1 }

</bundles_post_ra>
